<compile_context>
chip_gen: v7x
topology: tpu7x:2x2x1
jax: 0.10.0
libtpu: 0.0.40
codegen_flags: <defaults>
</compile_context>

<pallas_src>
import jax
import jax.numpy as jnp
from jax.experimental import pallas as pl
from jax.experimental.pallas import tpu as pltpu


NEG_BIG = -1e30  # bias for judge-lane-padding columns: exp(NEG_BIG - m) == 0 in f32


def judge_emb_kernel(x_ref, w1_ref, b1_ref, w2_ref, b2_ref, w3_ref, b3_ref, out_ref):
    """One batch tile: 3 MXU matmuls (bf16 operands, f32 accumulate) + log_softmax."""
    # linear1 + relu   (dropout1 is identity in eval mode); relu folded into bf16 downcast.
    h1 = jnp.dot(x_ref[...], w1_ref[...], preferred_element_type=jnp.float32)
    h1 = jnp.maximum(h1 + b1_ref[...], 0.0).astype(w2_ref.dtype)
    # linear2 + relu   (dropout2 is identity in eval mode)
    h2 = jnp.dot(h1, w2_ref[...], preferred_element_type=jnp.float32)
    h2 = jnp.maximum(h2 + b2_ref[...], 0.0).astype(w3_ref.dtype)
    # judge_embedding (judge axis lane-padded to 128; pad columns carry a -1e30 bias)
    logits = jnp.dot(h2, w3_ref[...], preferred_element_type=jnp.float32) + b3_ref[...]
    # log_softmax over the judge axis (pad columns contribute exp(-huge) == 0 exactly)
    m = jnp.max(logits, axis=-1, keepdims=True)
    shifted = logits - m
    lse = jnp.log(jnp.sum(jnp.exp(shifted), axis=-1, keepdims=True))
    out_ref[...] = (shifted - lse).astype(out_ref.dtype)


def _cdiv(a, b):
    return -(-a // b)


def _round_up(x, m):
    return (x + m - 1) // m * m


def _choose_batch_tile(B, block_b, min_grid_steps=2):
    """Batch tile: multiple of 16 (bf16 sublane packing), <= block_b, minimal batch-pad
    waste, and enough grid steps that v7x's two TensorCores both get work."""
    steps = max(_cdiv(B, block_b), min_grid_steps)
    tb = _round_up(_cdiv(B, steps), 16)
    return max(16, min(tb, _round_up(block_b, 16)))


def judge_emb_forward(x, w1, b1, w2, b2, w3, b3, *, block_b=1024,
                      out_dtype=jnp.float32, return_padded=False):
    """Forward pass of Judge_emb_model (eval mode). Weights are [in, out]."""
    B, input_dim = x.shape
    hidden = w1.shape[1]
    emb_dim, num_judges = w3.shape
    assert w2.shape == (hidden, hidden)
    assert emb_dim == hidden, "judge_embedding input dim must equal hidden_layer_dim"

    bf16 = jnp.bfloat16
    f32 = jnp.float32

    # --- lane padding: hidden and judge axes up to a multiple of 128 lanes ----------
    h_pad = _round_up(max(hidden, 128), 128)
    nj_pad = _round_up(max(num_judges, 128), 128)

    w1_p = jnp.zeros((input_dim, h_pad), bf16).at[:, :hidden].set(w1.astype(bf16))
    b1_p = jnp.zeros((1, h_pad), f32).at[:, :hidden].set(b1.reshape(1, -1).astype(f32))
    w2_p = jnp.zeros((h_pad, h_pad), bf16).at[:hidden, :hidden].set(w2.astype(bf16))
    b2_p = jnp.zeros((1, h_pad), f32).at[:, :hidden].set(b2.reshape(1, -1).astype(f32))
    w3_p = jnp.zeros((h_pad, nj_pad), bf16).at[:hidden, :num_judges].set(w3.astype(bf16))
    b3_p = jnp.full((1, nj_pad), NEG_BIG, f32).at[:, :num_judges].set(
        b3.reshape(1, -1).astype(f32))

    # --- batch tiling: 16-row granularity, minimal padding waste, >=2 grid steps ----
    tb = _choose_batch_tile(B, block_b)
    b_pad = _cdiv(B, tb) * tb
    x_bf = x.astype(bf16)
    if b_pad != B:
        x_bf = jnp.pad(x_bf, ((0, b_pad - B), (0, 0)))
    grid = (b_pad // tb,)

    # --- explicit VMEM budget (weights <=2 buffers + pipelined tiles + temporaries) --
    weight_bytes = (2 * (w1_p.size + w2_p.size + w3_p.size) * 2
                    + 2 * (b1_p.size + b2_p.size + b3_p.size) * 4)
    act_bytes = (2 * tb * input_dim * 2      # X tile, double-buffered (bf16)
                 + 2 * tb * nj_pad * 4       # out tile, double-buffered
                 + 2 * tb * h_pad * 4        # h1/h2 f32 temporaries
                 + 2 * tb * h_pad * 2        # h1/h2 bf16 copies
                 + 3 * tb * nj_pad * 4)      # logits / shifted / exp temporaries
    vmem_limit = max(32 << 20,
                     min(int(1.25 * (weight_bytes + act_bytes)) + (4 << 20),
                         64 << 20))          # stay within v7x's 64 MiB physical VMEM

    flops = 2 * b_pad * (input_dim * h_pad + h_pad * h_pad + h_pad * nj_pad)
    transcendentals = b_pad * (nj_pad + 1)
    out_itemsize = jnp.dtype(out_dtype).itemsize
    bytes_accessed = (x_bf.size * 2
                      + (w1_p.size + w2_p.size + w3_p.size) * 2
                      + (b1_p.size + b2_p.size + b3_p.size) * 4
                      + b_pad * nj_pad * out_itemsize)

    def build_in_specs(weight_pipeline_mode):
        kw = {} if weight_pipeline_mode is None else {"pipeline_mode": weight_pipeline_mode}

        def wspec(shape):  # whole array, VMEM-resident across the grid
            return pl.BlockSpec(shape, lambda i: (0, 0), **kw)

        return [
            pl.BlockSpec((tb, input_dim), lambda i: (i, 0)),   # X: tiled along batch
            wspec((input_dim, h_pad)),                         # W1 (hidden lane-padded)
            wspec((1, h_pad)),                                 # b1
            wspec((h_pad, h_pad)),                             # W2
            wspec((1, h_pad)),                                 # b2
            wspec((h_pad, nj_pad)),                            # W3 (judge lane-padded)
            wspec((1, nj_pad)),                                # b3 (lane-padded, -1e30)
        ]

    def run(weight_pipeline_mode):
        return pl.pallas_call(
            judge_emb_kernel,
            out_shape=jax.ShapeDtypeStruct((b_pad, nj_pad), out_dtype),
            grid=grid,
            in_specs=build_in_specs(weight_pipeline_mode),
            out_specs=pl.BlockSpec((tb, nj_pad), lambda i: (i, 0)),
            compiler_params=pltpu.CompilerParams(
                dimension_semantics=("parallel",),             # shards across TCs on v7x
                vmem_limit_bytes=vmem_limit),
            cost_estimate=pl.CostEstimate(
                flops=flops,
                transcendentals=transcendentals,
                bytes_accessed=bytes_accessed),
        )(x_bf, w1_p, b1_p, w2_p, b2_p, w3_p, b3_p)

    try:
        # Grid-invariant weights: request a single VMEM buffer (halves weight footprint
        # vs. the default double-buffering; matters for large hidden on v7x).
        out_padded = run(pl.Buffered(1))
    except Exception:
        # Fallback for JAX builds that reject per-BlockSpec buffer counts here.
        out_padded = run(None)

    if return_padded:
        # Consumer can fuse the [:, :num_judges] slice and skip an HBM round trip.
        return out_padded, num_judges
    # TODO(synk): downstream consumers should prefer return_padded=True (or bf16 out_dtype)
    # to avoid materializing this slice as a separate HBM pass.
    return out_padded[:B, :num_judges]


def reference_forward(x, w1, b1, w2, b2, w3, b3):
    """Pure-JAX f32 reference of the PyTorch module (eval mode)."""
    h1 = jnp.maximum(x @ w1 + b1, 0.0)
    h2 = jnp.maximum(h1 @ w2 + b2, 0.0)
    logits = h2 @ w3 + b3
    return jax.nn.log_softmax(logits, axis=1)


if __name__ == "__main__":
    # Small shapes consistent with the module.
    B = 8                 # batch
    input_dim = 32
    hidden_layer_dim = 32
    embedding_dim = 32    # must equal hidden_layer_dim for the forward to typecheck
    num_judges = 16

    key = jax.random.PRNGKey(0)
    kx, k1, k2, k3, kb1, kb2, kb3 = jax.random.split(key, 7)

    x = jax.random.normal(kx, (B, input_dim), dtype=jnp.float32)

    # init_weights(): weight ~ N(0, 0.1); stored as [in, out] (transpose of torch [out, in]).
    w1 = 0.1 * jax.random.normal(k1, (input_dim, hidden_layer_dim), dtype=jnp.float32)
    w2 = 0.1 * jax.random.normal(k2, (hidden_layer_dim, hidden_layer_dim), dtype=jnp.float32)
    w3 = 0.1 * jax.random.normal(k3, (embedding_dim, num_judges), dtype=jnp.float32)

    # Biases keep PyTorch's default Linear init: U(-1/sqrt(fan_in), 1/sqrt(fan_in)).
    b1 = jax.random.uniform(kb1, (1, hidden_layer_dim), dtype=jnp.float32,
                            minval=-1.0 / jnp.sqrt(input_dim), maxval=1.0 / jnp.sqrt(input_dim))
    b2 = jax.random.uniform(kb2, (1, hidden_layer_dim), dtype=jnp.float32,
                            minval=-1.0 / jnp.sqrt(hidden_layer_dim),
                            maxval=1.0 / jnp.sqrt(hidden_layer_dim))
    b3 = jax.random.uniform(kb3, (1, num_judges), dtype=jnp.float32,
                            minval=-1.0 / jnp.sqrt(embedding_dim),
                            maxval=1.0 / jnp.sqrt(embedding_dim))

    out = judge_emb_forward(x, w1, b1, w2, b2, w3, b3)
    out = jax.block_until_ready(out)

    ref = reference_forward(x, w1, b1, w2, b2, w3, b3)
    assert out.shape == (B, num_judges)
    # Matmul operands are bf16 in the kernel (f32 accumulation), so compare against the
    # pure-f32 reference with a bf16-level tolerance.
    assert jnp.allclose(out, ref, atol=3e-2, rtol=3e-2), "mismatch vs JAX reference"

    print("KERNEL_OK")
</pallas_src>

<mosaic_0001>
module attributes {stable_mosaic.version = 11 : i64} {
  func.func @judge_emb_kernel(%arg0: i32, %arg1: memref<16x32xbf16, #tpu.memory_space<vmem>>, %arg2: memref<32x128xbf16, #tpu.memory_space<vmem>>, %arg3: memref<1x128xf32, #tpu.memory_space<vmem>>, %arg4: memref<128x128xbf16, #tpu.memory_space<vmem>>, %arg5: memref<1x128xf32, #tpu.memory_space<vmem>>, %arg6: memref<128x128xbf16, #tpu.memory_space<vmem>>, %arg7: memref<1x128xf32, #tpu.memory_space<vmem>>, %arg8: memref<16x128xf32, #tpu.memory_space<vmem>>) attributes {dimension_semantics = [#tpu.dimension_semantics<parallel>], iteration_bounds = array<i64: 1>, scalar_prefetch = 0 : i64, scratch_operands = 0 : i64, tpu.core_type = #tpu.core_type<tc>, window_params = [{transform_indices = @transform_0, window_bounds = array<i64: 16, 32>}, {pipeline_mode = #tpu.pipeline_mode<synchronous>, transform_indices = @transform_1, window_bounds = array<i64: 32, 128>}, {pipeline_mode = #tpu.pipeline_mode<synchronous>, transform_indices = @transform_2, window_bounds = array<i64: 1, 128>}, {pipeline_mode = #tpu.pipeline_mode<synchronous>, transform_indices = @transform_3, window_bounds = array<i64: 128, 128>}, {pipeline_mode = #tpu.pipeline_mode<synchronous>, transform_indices = @transform_4, window_bounds = array<i64: 1, 128>}, {pipeline_mode = #tpu.pipeline_mode<synchronous>, transform_indices = @transform_5, window_bounds = array<i64: 128, 128>}, {pipeline_mode = #tpu.pipeline_mode<synchronous>, transform_indices = @transform_6, window_bounds = array<i64: 1, 128>}, {transform_indices = @transform_7, window_bounds = array<i64: 16, 128>}]} {
    %c0 = arith.constant 0 : index
    %c0_0 = arith.constant 0 : index
    %0 = vector.load %arg1[%c0, %c0_0] : memref<16x32xbf16, #tpu.memory_space<vmem>>, vector<16x32xbf16>
    %c0_1 = arith.constant 0 : index
    %c0_2 = arith.constant 0 : index
    %1 = vector.load %arg2[%c0_1, %c0_2] : memref<32x128xbf16, #tpu.memory_space<vmem>>, vector<32x128xbf16>
    %cst = arith.constant dense<0.000000e+00> : vector<16x128xf32>
    %2 = tpu.matmul %0, %1, %cst {dimension_numbers = #tpu.dot_dimension_numbers<[1], [0], [0], [1], [0, 0, 1, 1], [], []>} : vector<16x32xbf16>, vector<32x128xbf16>, vector<16x128xf32> -> vector<16x128xf32>
    %c0_3 = arith.constant 0 : index
    %c0_4 = arith.constant 0 : index
    %3 = vector.load %arg3[%c0_3, %c0_4] : memref<1x128xf32, #tpu.memory_space<vmem>>, vector<1x128xf32>
    %4 = vector.broadcast %3 : vector<1x128xf32> to vector<16x128xf32>
    %5 = arith.addf %2, %4 : vector<16x128xf32>
    %cst_5 = arith.constant 0.000000e+00 : f32
    %6 = vector.broadcast %cst_5 : f32 to vector<16x128xf32>
    %7 = arith.maximumf %5, %6 : vector<16x128xf32>
    %8 = arith.truncf %7 : vector<16x128xf32> to vector<16x128xbf16>
    %c0_6 = arith.constant 0 : index
    %c0_7 = arith.constant 0 : index
    %9 = vector.load %arg4[%c0_6, %c0_7] : memref<128x128xbf16, #tpu.memory_space<vmem>>, vector<128x128xbf16>
    %cst_8 = arith.constant dense<0.000000e+00> : vector<16x128xf32>
    %10 = tpu.matmul %8, %9, %cst_8 {dimension_numbers = #tpu.dot_dimension_numbers<[1], [0], [0], [1], [0, 0, 1, 1], [], []>} : vector<16x128xbf16>, vector<128x128xbf16>, vector<16x128xf32> -> vector<16x128xf32>
    %c0_9 = arith.constant 0 : index
    %c0_10 = arith.constant 0 : index
    %11 = vector.load %arg5[%c0_9, %c0_10] : memref<1x128xf32, #tpu.memory_space<vmem>>, vector<1x128xf32>
    %12 = vector.broadcast %11 : vector<1x128xf32> to vector<16x128xf32>
    %13 = arith.addf %10, %12 : vector<16x128xf32>
    %cst_11 = arith.constant 0.000000e+00 : f32
    %14 = vector.broadcast %cst_11 : f32 to vector<16x128xf32>
    %15 = arith.maximumf %13, %14 : vector<16x128xf32>
    %16 = arith.truncf %15 : vector<16x128xf32> to vector<16x128xbf16>
    %c0_12 = arith.constant 0 : index
    %c0_13 = arith.constant 0 : index
    %17 = vector.load %arg6[%c0_12, %c0_13] : memref<128x128xbf16, #tpu.memory_space<vmem>>, vector<128x128xbf16>
    %cst_14 = arith.constant dense<0.000000e+00> : vector<16x128xf32>
    %18 = tpu.matmul %16, %17, %cst_14 {dimension_numbers = #tpu.dot_dimension_numbers<[1], [0], [0], [1], [0, 0, 1, 1], [], []>} : vector<16x128xbf16>, vector<128x128xbf16>, vector<16x128xf32> -> vector<16x128xf32>
    %c0_15 = arith.constant 0 : index
    %c0_16 = arith.constant 0 : index
    %19 = vector.load %arg7[%c0_15, %c0_16] : memref<1x128xf32, #tpu.memory_space<vmem>>, vector<1x128xf32>
    %20 = vector.broadcast %19 : vector<1x128xf32> to vector<16x128xf32>
    %21 = arith.addf %18, %20 : vector<16x128xf32>
    %cst_17 = arith.constant dense<0xFF800000> : vector<16xf32>
    %22 = vector.multi_reduction <maximumf>, %21, %cst_17 [1] : vector<16x128xf32> to vector<16xf32>
    %23 = vector.shape_cast %22 : vector<16xf32> to vector<16x1xf32>
    %24 = vector.broadcast %23 : vector<16x1xf32> to vector<16x128xf32>
    %25 = arith.subf %21, %24 : vector<16x128xf32>
    %26 = math.exp %25 : vector<16x128xf32>
    %cst_18 = arith.constant dense<0.000000e+00> : vector<16xf32>
    %27 = vector.multi_reduction <add>, %26, %cst_18 [1] : vector<16x128xf32> to vector<16xf32>
    %28 = vector.shape_cast %27 : vector<16xf32> to vector<16x1xf32>
    %29 = math.log %28 : vector<16x1xf32>
    %30 = vector.broadcast %29 : vector<16x1xf32> to vector<16x128xf32>
    %31 = arith.subf %25, %30 : vector<16x128xf32>
    %c0_19 = arith.constant 0 : index
    %c0_20 = arith.constant 0 : index
    %32 = vector.load %arg8[%c0_19, %c0_20] : memref<16x128xf32, #tpu.memory_space<vmem>>, vector<16x128xf32>
    tpu.vector_store %arg8[%c0_19, %c0_20], %31 {strides = array<i32>} : memref<16x128xf32, #tpu.memory_space<vmem>>, vector<16x128xf32>,
    return
  }
  func.func @transform_0(%arg0: i32) -> (i32, i32) {
    %c0_i32 = arith.constant 0 : i32
    %c0_i32_0 = arith.constant 0 : i32
    return %arg0, %c0_i32 : i32, i32
  }
  func.func @transform_1(%arg0: i32) -> (i32, i32) {
    %c0_i32 = arith.constant 0 : i32
    %c0_i32_0 = arith.constant 0 : i32
    %c0_i32_1 = arith.constant 0 : i32
    return %c0_i32, %c0_i32_0 : i32, i32
  }
  func.func @transform_2(%arg0: i32) -> (i32, i32) {
    %c0_i32 = arith.constant 0 : i32
    %c0_i32_0 = arith.constant 0 : i32
    %c0_i32_1 = arith.constant 0 : i32
    return %c0_i32, %c0_i32_0 : i32, i32
  }
  func.func @transform_3(%arg0: i32) -> (i32, i32) {
    %c0_i32 = arith.constant 0 : i32
    %c0_i32_0 = arith.constant 0 : i32
    %c0_i32_1 = arith.constant 0 : i32
    return %c0_i32, %c0_i32_0 : i32, i32
  }
  func.func @transform_4(%arg0: i32) -> (i32, i32) {
    %c0_i32 = arith.constant 0 : i32
    %c0_i32_0 = arith.constant 0 : i32
    %c0_i32_1 = arith.constant 0 : i32
    return %c0_i32, %c0_i32_0 : i32, i32
  }
  func.func @transform_5(%arg0: i32) -> (i32, i32) {
    %c0_i32 = arith.constant 0 : i32
    %c0_i32_0 = arith.constant 0 : i32
    %c0_i32_1 = arith.constant 0 : i32
    return %c0_i32, %c0_i32_0 : i32, i32
  }
  func.func @transform_6(%arg0: i32) -> (i32, i32) {
    %c0_i32 = arith.constant 0 : i32
    %c0_i32_0 = arith.constant 0 : i32
    %c0_i32_1 = arith.constant 0 : i32
    return %c0_i32, %c0_i32_0 : i32, i32
  }
  func.func @transform_7(%arg0: i32) -> (i32, i32) {
    %c0_i32 = arith.constant 0 : i32
    %c0_i32_0 = arith.constant 0 : i32
    return %arg0, %c0_i32 : i32, i32
  }
}

module attributes {stable_mosaic.version = 11 : i64} {
  func.func @judge_emb_kernel(%arg0: i32, %arg1: memref<16x32xbf16, #tpu.memory_space<vmem>>, %arg2: memref<32x128xbf16, #tpu.memory_space<vmem>>, %arg3: memref<1x128xf32, #tpu.memory_space<vmem>>, %arg4: memref<128x128xbf16, #tpu.memory_space<vmem>>, %arg5: memref<1x128xf32, #tpu.memory_space<vmem>>, %arg6: memref<128x128xbf16, #tpu.memory_space<vmem>>, %arg7: memref<1x128xf32, #tpu.memory_space<vmem>>, %arg8: memref<16x128xf32, #tpu.memory_space<vmem>>) attributes {dimension_semantics = [#tpu.dimension_semantics<parallel>], iteration_bounds = array<i64: 1>, scalar_prefetch = 0 : i64, scratch_operands = 0 : i64, tpu.core_type = #tpu.core_type<tc>, window_params = [{transform_indices = @transform_0, window_bounds = array<i64: 16, 32>}, {pipeline_mode = #tpu.pipeline_mode<synchronous>, transform_indices = @transform_1, window_bounds = array<i64: 32, 128>}, {pipeline_mode = #tpu.pipeline_mode<synchronous>, transform_indices = @transform_2, window_bounds = array<i64: 1, 128>}, {pipeline_mode = #tpu.pipeline_mode<synchronous>, transform_indices = @transform_3, window_bounds = array<i64: 128, 128>}, {pipeline_mode = #tpu.pipeline_mode<synchronous>, transform_indices = @transform_4, window_bounds = array<i64: 1, 128>}, {pipeline_mode = #tpu.pipeline_mode<synchronous>, transform_indices = @transform_5, window_bounds = array<i64: 128, 128>}, {pipeline_mode = #tpu.pipeline_mode<synchronous>, transform_indices = @transform_6, window_bounds = array<i64: 1, 128>}, {transform_indices = @transform_7, window_bounds = array<i64: 16, 128>}]} {
    %c0 = arith.constant 0 : index
    %c0_0 = arith.constant 0 : index
    %0 = vector.load %arg1[%c0, %c0_0] : memref<16x32xbf16, #tpu.memory_space<vmem>>, vector<16x32xbf16>
    %c0_1 = arith.constant 0 : index
    %c0_2 = arith.constant 0 : index
    %1 = vector.load %arg2[%c0_1, %c0_2] : memref<32x128xbf16, #tpu.memory_space<vmem>>, vector<32x128xbf16>
    %cst = arith.constant dense<0.000000e+00> : vector<16x128xf32>
    %2 = tpu.matmul %0, %1, %cst {dimension_numbers = #tpu.dot_dimension_numbers<[1], [0], [0], [1], [0, 0, 1, 1], [], []>} : vector<16x32xbf16>, vector<32x128xbf16>, vector<16x128xf32> -> vector<16x128xf32>
    %c0_3 = arith.constant 0 : index
    %c0_4 = arith.constant 0 : index
    %3 = vector.load %arg3[%c0_3, %c0_4] : memref<1x128xf32, #tpu.memory_space<vmem>>, vector<1x128xf32>
    %4 = vector.broadcast %3 : vector<1x128xf32> to vector<16x128xf32>
    %5 = arith.addf %2, %4 : vector<16x128xf32>
    %cst_5 = arith.constant 0.000000e+00 : f32
    %6 = vector.broadcast %cst_5 : f32 to vector<16x128xf32>
    %7 = arith.maximumf %5, %6 : vector<16x128xf32>
    %8 = arith.truncf %7 : vector<16x128xf32> to vector<16x128xbf16>
    %c0_6 = arith.constant 0 : index
    %c0_7 = arith.constant 0 : index
    %9 = vector.load %arg4[%c0_6, %c0_7] : memref<128x128xbf16, #tpu.memory_space<vmem>>, vector<128x128xbf16>
    %cst_8 = arith.constant dense<0.000000e+00> : vector<16x128xf32>
    %10 = tpu.matmul %8, %9, %cst_8 {dimension_numbers = #tpu.dot_dimension_numbers<[1], [0], [0], [1], [0, 0, 1, 1], [], []>} : vector<16x128xbf16>, vector<128x128xbf16>, vector<16x128xf32> -> vector<16x128xf32>
    %c0_9 = arith.constant 0 : index
    %c0_10 = arith.constant 0 : index
    %11 = vector.load %arg5[%c0_9, %c0_10] : memref<1x128xf32, #tpu.memory_space<vmem>>, vector<1x128xf32>
    %12 = vector.broadcast %11 : vector<1x128xf32> to vector<16x128xf32>
    %13 = arith.addf %10, %12 : vector<16x128xf32>
    %cst_11 = arith.constant 0.000000e+00 : f32
    %14 = vector.broadcast %cst_11 : f32 to vector<16x128xf32>
    %15 = arith.maximumf %13, %14 : vector<16x128xf32>
    %16 = arith.truncf %15 : vector<16x128xf32> to vector<16x128xbf16>
    %c0_12 = arith.constant 0 : index
    %c0_13 = arith.constant 0 : index
    %17 = vector.load %arg6[%c0_12, %c0_13] : memref<128x128xbf16, #tpu.memory_space<vmem>>, vector<128x128xbf16>
    %cst_14 = arith.constant dense<0.000000e+00> : vector<16x128xf32>
    %18 = tpu.matmul %16, %17, %cst_14 {dimension_numbers = #tpu.dot_dimension_numbers<[1], [0], [0], [1], [0, 0, 1, 1], [], []>} : vector<16x128xbf16>, vector<128x128xbf16>, vector<16x128xf32> -> vector<16x128xf32>
    %c0_15 = arith.constant 0 : index
    %c0_16 = arith.constant 0 : index
    %19 = vector.load %arg7[%c0_15, %c0_16] : memref<1x128xf32, #tpu.memory_space<vmem>>, vector<1x128xf32>
    %20 = vector.broadcast %19 : vector<1x128xf32> to vector<16x128xf32>
    %21 = arith.addf %18, %20 : vector<16x128xf32>
    %cst_17 = arith.constant dense<0xFF800000> : vector<16xf32>
    %22 = vector.multi_reduction <maximumf>, %21, %cst_17 [1] : vector<16x128xf32> to vector<16xf32>
    %23 = vector.shape_cast %22 : vector<16xf32> to vector<16x1xf32>
    %24 = vector.broadcast %23 : vector<16x1xf32> to vector<16x128xf32>
    %25 = arith.subf %21, %24 : vector<16x128xf32>
    %26 = math.exp %25 : vector<16x128xf32>
    %cst_18 = arith.constant dense<0.000000e+00> : vector<16xf32>
    %27 = vector.multi_reduction <add>, %26, %cst_18 [1] : vector<16x128xf32> to vector<16xf32>
    %28 = vector.shape_cast %27 : vector<16xf32> to vector<16x1xf32>
    %29 = math.log %28 : vector<16x1xf32>
    %30 = vector.broadcast %29 : vector<16x1xf32> to vector<16x128xf32>
    %31 = arith.subf %25, %30 : vector<16x128xf32>
    %c0_19 = arith.constant 0 : index
    %c0_20 = arith.constant 0 : index
    %32 = vector.load %arg8[%c0_19, %c0_20] : memref<16x128xf32, #tpu.memory_space<vmem>>, vector<16x128xf32>
    tpu.vector_store %arg8[%c0_19, %c0_20], %31 {strides = array<i32>} : memref<16x128xf32, #tpu.memory_space<vmem>>, vector<16x128xf32>,
    return
  }
  func.func @transform_0(%arg0: i32) -> (i32, i32) {
    %c0_i32 = arith.constant 0 : i32
    %c0_i32_0 = arith.constant 0 : i32
    return %arg0, %c0_i32 : i32, i32
  }
  func.func @transform_1(%arg0: i32) -> (i32, i32) {
    %c0_i32 = arith.constant 0 : i32
    %c0_i32_0 = arith.constant 0 : i32
    %c0_i32_1 = arith.constant 0 : i32
    return %c0_i32, %c0_i32_0 : i32, i32
  }
  func.func @transform_2(%arg0: i32) -> (i32, i32) {
    %c0_i32 = arith.constant 0 : i32
    %c0_i32_0 = arith.constant 0 : i32
    %c0_i32_1 = arith.constant 0 : i32
    return %c0_i32, %c0_i32_0 : i32, i32
  }
  func.func @transform_3(%arg0: i32) -> (i32, i32) {
    %c0_i32 = arith.constant 0 : i32
    %c0_i32_0 = arith.constant 0 : i32
    %c0_i32_1 = arith.constant 0 : i32
    return %c0_i32, %c0_i32_0 : i32, i32
  }
  func.func @transform_4(%arg0: i32) -> (i32, i32) {
    %c0_i32 = arith.constant 0 : i32
    %c0_i32_0 = arith.constant 0 : i32
    %c0_i32_1 = arith.constant 0 : i32
    return %c0_i32, %c0_i32_0 : i32, i32
  }
  func.func @transform_5(%arg0: i32) -> (i32, i32) {
    %c0_i32 = arith.constant 0 : i32
    %c0_i32_0 = arith.constant 0 : i32
    %c0_i32_1 = arith.constant 0 : i32
    return %c0_i32, %c0_i32_0 : i32, i32
  }
  func.func @transform_6(%arg0: i32) -> (i32, i32) {
    %c0_i32 = arith.constant 0 : i32
    %c0_i32_0 = arith.constant 0 : i32
    %c0_i32_1 = arith.constant 0 : i32
    return %c0_i32, %c0_i32_0 : i32, i32
  }
  func.func @transform_7(%arg0: i32) -> (i32, i32) {
    %c0_i32 = arith.constant 0 : i32
    %c0_i32_0 = arith.constant 0 : i32
    return %arg0, %c0_i32 : i32, i32
  }
}

</mosaic_0001>

<bundles_post_ra>
// kernel: tpu_custom_call.1
= control target key start
LH: loop header
LB: loop body
LE: loop exit
PB: predicated region body
PF: predicated region fallthrough
CT: control target
= control target key end

     0   :  { %12 = vsyncpa [#allocation3], 0  ;;  %s847_s0 = inlined_call_operand.hbm [shape: bf16[16,32], index: 0, kind: input, shape index: {}]   ;;  %s848_s1 = inlined_call_operand.hbm [shape: bf16[32,128], index: 1, kind: input, shape index: {}]   ;;  %s849_s2 = inlined_call_operand.vmem [shape: f32[1,128], index: 2, kind: input, shape index: {}]   ;;  %s850_s3 = inlined_call_operand.hbm [shape: bf16[128,128], index: 3, kind: input, shape index: {}]   ;;  %s851_s4 = inlined_call_operand.vmem [shape: f32[1,128], index: 4, kind: input, shape index: {}]   ;;  %s852_s5 = inlined_call_operand.hbm [shape: bf16[128,128], index: 5, kind: input, shape index: {}]   ;;  %s853_s6 = inlined_call_operand.vmem [shape: f32[1,128], index: 6, kind: input, shape index: {}]   ;;  %s854_s7 = inlined_call_operand.hbm [shape: f32[16,128], index: 7, kind: output, shape index: {}]  }
   0x1   :  { %13 = vsyncpa [#allocation6], 0 }
   0x2   :  { %14 = vsyncpa [#allocation9], 0 }
   0x3   :  { %15 = vsyncpa [#allocation4], 0  ;;  %s677_s24 = smov [#allocation5]   ;;  %s678_s26 = smov [#allocation2]  }
   0x4   :  { %s33_s25 = sshll.u32 %s677_s24, 4  ;;  %s21_s27 = sshll.u32 %s678_s26, 4  ;;  %s34_s25 = int_to_ptr.vmem [resolvable:$true] %s33_s25  ;;  %s728_s27 = int_to_ptr.vmem [resolvable:$true] %s21_s27 }
   0x5   :  { %s559_s30 = scalar_lea.hbm %s848_s1, 256 }
   0x6   :  { %p560_p0 = scmp.ne.s32.totalorder %s848_s1, %s559_s30  ;;  %p563_p1 = scmp.lt.u32.totalorder %s559_s30, %s848_s1 }
   0x8   :  { %p565_p2 = pnand %p563_p1, %p560_p0 }
   0xa   :  { %568 = shalt.err (!%p565_p2)
}
   0xb   :  { %s569_s12 = scalar_lea.vmem %s34_s25, 256  ;;  %p574_p4 = scmp.lt.s32.totalorder %s34_s25, %s34_s25 }
   0xc   :  { %p570_p3 = scmp.ne.s32.totalorder %s34_s25, %s569_s12  ;;  %p575_p5 = scmp.lt.s32.totalorder %s569_s12, %s569_s12 }
   0xe   :  { %p576_p6 = por %p575_p5, %p574_p4 }
  0x10   :  { %p577_p7 = pnand %p576_p6, %p570_p3 }
  0x12   :  { %580 = shalt.err (!%p577_p7)
}
  0x13   :  { %s679_s13 = smov 64   ;;  %s680_s14 = smov 4  }
  0x14   :  { %39 = dma.hbm_to_vmem [thread:$0]  %s848_s1, 256, %s34_s25, [#allocation6], %s679_s13, %s679_s13, %s680_s14  }
  0x15   :  { %s581_s19 = scalar_lea.hbm %s847_s0, 128 }
  0x16   :  { %p582_p8 = scmp.ne.s32.totalorder %s847_s0, %s581_s19  ;;  %p585_p9 = scmp.lt.u32.totalorder %s581_s19, %s847_s0 }
  0x18   :  { %p587_p10 = pnand %p585_p9, %p582_p8 }
  0x1a   :  { %590 = shalt.err (!%p587_p10)
}
  0x1b   :  { %s591_s24 = scalar_lea.vmem %s728_s27, 128  ;;  %p596_p12 = scmp.lt.s32.totalorder %s728_s27, %s728_s27 }
  0x1c   :  { %p592_p11 = scmp.ne.s32.totalorder %s728_s27, %s591_s24  ;;  %p597_p13 = scmp.lt.s32.totalorder %s591_s24, %s591_s24 }
  0x1e   :  { %p598_p0 = por %p597_p13, %p596_p12 }
  0x20   :  { %p599_p1 = pnand %p598_p0, %p592_p11 }
  0x22   :  { %602 = shalt.err (!%p599_p1)
}
  0x23   :  { %27 = dma.hbm_to_vmem [thread:$0]  %s847_s0, 128, %s728_s27, [#allocation3], %s679_s13, %s679_s13, %s680_s14  }
  0x24   :  { %s681_s26 = smov [#allocation7]   ;;  %s682_s29 = smov [#allocation8]  }
  0x25   :  { %s47_s28 = sshll.u32 %s681_s26, 4  ;;  %s61_s30 = sshll.u32 %s682_s29, 4  ;;  %s48_s28 = int_to_ptr.vmem [resolvable:$true] %s47_s28  ;;  %s765_s30 = int_to_ptr.vmem [resolvable:$true] %s61_s30 }
  0x26   :  { %s603_s10 = scalar_lea.hbm %s850_s3, 1024 }
  0x27   :  { %p604_p2 = scmp.ne.s32.totalorder %s850_s3, %s603_s10  ;;  %p607_p3 = scmp.lt.u32.totalorder %s603_s10, %s850_s3 }
  0x29   :  { %p609_p4 = pnand %p607_p3, %p604_p2 }
  0x2b   :  { %612 = shalt.err (!%p609_p4)
}
  0x2c   :  { %s613_s0 = scalar_lea.vmem %s48_s28, 1024  ;;  %p618_p6 = scmp.lt.s32.totalorder %s48_s28, %s48_s28 }
  0x2d   :  { %p614_p5 = scmp.ne.s32.totalorder %s48_s28, %s613_s0  ;;  %p619_p7 = scmp.lt.s32.totalorder %s613_s0, %s613_s0 }
  0x2f   :  { %p620_p8 = por %p619_p7, %p618_p6 }
  0x31   :  { %p621_p9 = pnand %p620_p8, %p614_p5 }
  0x33   :  { %624 = shalt.err (!%p621_p9)
}
  0x34   :  { %53 = dma.hbm_to_vmem [thread:$0]  %s850_s3, 1024, %s48_s28, [#allocation6], %s679_s13, %s679_s13, %s680_s14  }
  0x35   :  { %s625_s20 = scalar_lea.hbm %s852_s5, 1024 }
  0x36   :  { %p626_p10 = scmp.ne.s32.totalorder %s852_s5, %s625_s20  ;;  %p629_p11 = scmp.lt.u32.totalorder %s625_s20, %s852_s5 }
  0x38   :  { %p631_p12 = pnand %p629_p11, %p626_p10 }
  0x3a   :  { %634 = shalt.err (!%p631_p12)
}
  0x3b   :  { %s635_s1 = scalar_lea.vmem %s765_s30, 1024  ;;  %p640_p0 = scmp.lt.s32.totalorder %s765_s30, %s765_s30 }
  0x3c   :  { %p636_p13 = scmp.ne.s32.totalorder %s765_s30, %s635_s1  ;;  %p641_p1 = scmp.lt.s32.totalorder %s635_s1, %s635_s1 }
  0x3e   :  { %p642_p2 = por %p641_p1, %p640_p0 }
  0x40   :  { %p643_p3 = pnand %p642_p2, %p636_p13 }
  0x42   :  { %646 = shalt.err (!%p643_p3)
}
  0x43   :  { %67 = dma.hbm_to_vmem [thread:$0]  %s852_s5, 1024, %s765_s30, [#allocation9], %s679_s13, %s679_s13, %s680_s14  }
  0x44   :  { %669 = dma.done.wait [#allocation3], 128  }
  0x45   :  { %670 = vsyncadd [#allocation3], 4294967168 }
  0x46   :  { %671 = dma.done.wait [#allocation6], 1280  }
  0x47   :  { %672 = vsyncadd [#allocation6], 4294966016 }
  0x48   :  { %673 = dma.done.wait [#allocation9], 1024  }
  0x49   :  { %674 = vsyncadd [#allocation9], 4294966272  ;;  %v683_v0 = vmov 0.0   ;;  %vm684_vm0 = vmmov 0   ;;  %v532_v1 = vld [vmem:[#allocation5] sm:$0xff]   ;;  %v533_v2 = vld [vmem:[#allocation5 + $0x8] sm:$0xff]  }
  0x4a   :  { %473 = vmatprep.subr.bf16.mxu0 %v683_v0  ;;  %477 = vmatprep.mubr.msk.bf16.mxu0 %vm684_vm0, %v683_v0  ;;  %v535_v3 = vld [vmem:[#allocation7] sm:$0xff]   ;;  %v534_v4 = vld [vmem:[#allocation2] sm:$0xff]   ;;  %vm113_vm1 = vcmask 261120   ;;  %v537_v6 = vld [vmem:[#allocation7 + $0x10] sm:$0xff]  }
  0x4b   :  { %481 = vmatprep.subr.bf16.mxu1 %v683_v0  ;;  %497 = vmatprep.mubr.msk.bf16.mxu1 %vm684_vm0, %v683_v0  ;;  %v536_v5 = vld [vmem:[#allocation7 + $0x8] sm:$0xff]   ;;  %v538_v7 = vld [vmem:[#allocation7 + $0x18] sm:$0xff]   ;;  %v539_v8 = vld [vmem:[#allocation7 + $0x20] sm:$0xff]  }
  0x4c   :  { %474 = vmatpush3.bf16.msra.mxu0 %v532_v1  ;;  %482 = vmatpush3.bf16.msra.mxu1 %v535_v3  ;;  %v540_v9 = vld [vmem:[#allocation7 + $0x28] sm:$0xff]   ;;  %v541_v10 = vld [vmem:[#allocation7 + $0x30] sm:$0xff]   ;;  %v542_v11 = vld [vmem:[#allocation7 + $0x38] sm:$0xff]  }
  0x4d   :  { %475 = vmatprep.subr.bf16.mxu0 %v683_v0  ;;  %483 = vmatprep.subr.bf16.mxu1 %v683_v0  ;;  %v543_v12 = vld [vmem:[#allocation8] sm:$0xff]   ;;  %v544_v13 = vld [vmem:[#allocation8 + $0x8] sm:$0xff]   ;;  %v545_v14 = vld [vmem:[#allocation8 + $0x10] sm:$0xff]  }
  0x4e   :  { %v546_v15 = vld [vmem:[#allocation8 + $0x18] sm:$0xff]   ;;  %v547_v16 = vld [vmem:[#allocation8 + $0x20] sm:$0xff]   ;;  %v548_v17 = vld [vmem:[#allocation8 + $0x28] sm:$0xff]  }
  0x4f   :  { %v429_v18 = vld [vmem:[%s849_s2] ss:$0 sm:$0xff]  ;;  %v549_v28 = vld [vmem:[#allocation8 + $0x30] sm:$0xff]   ;;  %v550_v29 = vld [vmem:[#allocation8 + $0x38] sm:$0xff]  }
  0x50   :  { %476 = vmatpush3.bf16.msra.mxu0 %v533_v2  ;;  %484 = vmatpush3.bf16.msra.mxu1 %v536_v5  ;;  %v434_v30 = vld [vmem:[%s851_s4] ss:$0 sm:$0xff]  ;;  %s685_s4 = smov [#allocation10]  }
  0x51   :  { %501 = vmatprep.subr.bf16.mxu0 %v683_v0  ;;  %485 = vmatprep.subr.bf16.mxu1 %v683_v0  ;;  %v443_v40 = vld [vmem:[%s853_s6] ss:$0 sm:$0xff]  ;;  %s415_s6 = sshll.u32 %s685_s4, 4  ;;  %s416_s6 = int_to_ptr.vmem [resolvable:$true] %s415_s6 }
  0x52   :  { %s647_s29 = scalar_lea.vmem %s416_s6, 256  ;;  %p652_p5 = scmp.lt.s32.totalorder %s416_s6, %s416_s6 }
  0x53   :  { %478 = vmatmul.mubr.msk.bf16.vlgmr.msra.gmra.mrb[0].mxu0 %vm113_vm1, %v534_v4  ;;  %p648_p4 = scmp.ne.s32.totalorder %s416_s6, %s647_s29  ;;  %p653_p6 = scmp.lt.s32.totalorder %s647_s29, %s647_s29 }
  0x54   :  { %517 = vmatprep.mubr.msk.bf16.mxu0 %vm684_vm0, %v683_v0  ;;  %486 = vmatpush3.bf16.msra.mxu1 %v537_v6 }
  0x55   :  { %487 = vmatprep.subr.bf16.mxu1 %v683_v0  ;;  %502 = vmatpush3.bf16.msra.mxu0 %v543_v12  ;;  %p654_p7 = por %p653_p6, %p652_p5 }
  0x56   :  { %503 = vmatprep.subr.bf16.mxu0 %v683_v0 }
  0x57   :  { %p655_p8 = pnand %p654_p7, %p648_p4 }
  0x58   :  { %488 = vmatpush3.bf16.msra.mxu1 %v538_v7 }
  0x59   :  { %489 = vmatprep.subr.bf16.mxu1 %v683_v0  ;;  %504 = vmatpush3.bf16.msra.mxu0 %v544_v13 }
  0x5a   :  { %505 = vmatprep.subr.bf16.mxu0 %v683_v0 }
  0x5c   :  { %490 = vmatpush3.bf16.msra.mxu1 %v539_v8 }
  0x5d   :  { %491 = vmatprep.subr.bf16.mxu1 %v683_v0  ;;  %506 = vmatpush3.bf16.msra.mxu0 %v545_v14 }
  0x5e   :  { %507 = vmatprep.subr.bf16.mxu0 %v683_v0 }
  0x60   :  { %492 = vmatpush3.bf16.msra.mxu1 %v540_v9 }
  0x61   :  { %493 = vmatprep.subr.bf16.mxu1 %v683_v0  ;;  %508 = vmatpush3.bf16.msra.mxu0 %v546_v15 }
  0x62   :  { %509 = vmatprep.subr.bf16.mxu0 %v683_v0 }
  0x64   :  { %494 = vmatpush3.bf16.msra.mxu1 %v541_v10 }
  0x65   :  { %495 = vmatprep.subr.bf16.mxu1 %v683_v0  ;;  %510 = vmatpush3.bf16.msra.mxu0 %v547_v16 }
  0x66   :  { %511 = vmatprep.subr.bf16.mxu0 %v683_v0 }
  0x68   :  { %496 = vmatpush3.bf16.msra.mxu1 %v542_v11 }
  0x69   :  { %512 = vmatpush3.bf16.msra.mxu0 %v548_v17 }
  0x6a   :  { %513 = vmatprep.subr.bf16.mxu0 %v683_v0 }
  0x6d   :  { %514 = vmatpush3.bf16.msra.mxu0 %v549_v28 }
  0x6e   :  { %515 = vmatprep.subr.bf16.mxu0 %v683_v0 }
  0x71   :  { %516 = vmatpush3.bf16.msra.mxu0 %v550_v29 }
 0x126   :  { %v151_v19 = vpop.f32.mrb[0].mxu0 }
 0x127   :  { %v152_v20 = vadd.f32 %v429_v18, %v151_v19  ;;  %v479_v21 = vpop.f32.mrb[1].mxu0 }
 0x128   :  { %v154_v22 = vpop.f32.mrb[2].mxu0 }
 0x129   :  { %v155_v23 = vadd.f32 %v429_v18, %v154_v22  ;;  %v480_v24 = vpop.f32.mrb[3].mxu0  ;;  %v158_v25 = vmax.f32 %v152_v20, 0.0 }
 0x12b   :  { %v159_v26 = vmax.f32 %v155_v23, 0.0 }
 0x12d   :  { %v160_v27 = vpack.c.bf16 %v159_v26, %v158_v25 }
 0x12f   :  { %498 = vmatmul.mubr.bf16.vlgmr.msra.gmra.mrb[0].mxu1 %v160_v27 }
 0x202   :  { %v266_v31 = vpop.f32.mrb[0].mxu1 }
 0x203   :  { %v267_v32 = vadd.f32 %v434_v30, %v266_v31  ;;  %v499_v33 = vpop.f32.mrb[1].mxu1 }
 0x204   :  { %v269_v34 = vpop.f32.mrb[2].mxu1 }
 0x205   :  { %v270_v35 = vadd.f32 %v434_v30, %v269_v34  ;;  %v500_v36 = vpop.f32.mrb[3].mxu1  ;;  %v273_v37 = vmax.f32 %v267_v32, 0.0 }
 0x207   :  { %v274_v38 = vmax.f32 %v270_v35, 0.0 }
 0x209   :  { %v275_v39 = vpack.c.bf16 %v274_v38, %v273_v37 }
 0x20b   :  { %518 = vmatmul.mubr.bf16.vlgmr.msra.gmra.mrb[4].mxu0 %v275_v39 }
 0x2de   :  { %v381_v41 = vpop.f32.mrb[4].mxu0 }
 0x2df   :  { %v382_v42 = vadd.f32 %v443_v40, %v381_v41  ;;  %v519_v43 = vpop.f32.mrb[5].mxu0 }
 0x2e0   :  { %v384_v44 = vpop.f32.mrb[6].mxu0 }
 0x2e1   :  { %388 = vmax.xlane.f32.xlu0 %v382_v42  ;;  %v520_v45 = vpop.f32.mrb[7].mxu0  ;;  %v385_v46 = vadd.f32 %v443_v40, %v384_v44 }
 0x2e5   :  { %390 = vmax.xlane.f32.xlu0 %v385_v46 }
 0x36e   :  { %v389_v47 = vpop.xlane.xlu0 %388 }
 0x36f   :  { %v392_v48 = vsub.f32 %v382_v42, %v389_v47 }
 0x371   :  { %v394_v49 = vmul.f32 1.442695, %v392_v48 }
 0x372   :  { %v391_v50 = vpop.xlane.xlu0 %390 }
 0x373   :  { %v393_v51 = vsub.f32 %v385_v46, %v391_v50  ;;  %551 = vpow2.f32 %v394_v49 }
 0x375   :  { %v396_v52 = vmul.f32 1.442695, %v393_v51 }
 0x377   :  { %553 = vpow2.f32 %v396_v52 }
 0x37d   :  { %v552_v53 = vpop.eup %551 }
 0x37e   :  { %398 = vadd.xlane.f32.xlu1 %v552_v53 }
 0x381   :  { %v554_v54 = vpop.eup %553 }
 0x382   :  { %400 = vadd.xlane.f32.xlu1 %v554_v54 }
 0x40b   :  { %v399_v55 = vpop.xlane.xlu1 %398 }
 0x40c   :  { %555 = vlog2.f32 %v399_v55 }
 0x40f   :  { %v401_v56 = vpop.xlane.xlu1 %400 }
 0x410   :  { %557 = vlog2.f32 %v401_v56 }
 0x416   :  { %v556_v57 = vpop.eup %555 }
 0x417   :  { %v403_v58 = vmul.f32 0.6931472, %v556_v57 }
 0x419   :  { %v406_v59 = vsub.f32 %v392_v48, %v403_v58 }
 0x41a   :  { %v558_v60 = vpop.eup %557 }
 0x41b   :  { %408 = vst [vmem:[#allocation10] sm:$0xff] %v406_v59  ;;  %v405_v61 = vmul.f32 0.6931472, %v558_v60 }
 0x41d   :  { %v407_v62 = vsub.f32 %v393_v51, %v405_v61 }
 0x41f   :  { %409 = vst [vmem:[#allocation10 + $0x8] sm:$0xff] %v407_v62 }
 0x420   :  { %658 = shalt.err (!%p655_p8)
}
 0x421   :  { %s659_s9 = scalar_lea.hbm %s854_s7, 256 }
 0x422   :  { %p660_p9 = scmp.ne.s32.totalorder %s854_s7, %s659_s9  ;;  %p663_p10 = scmp.lt.u32.totalorder %s659_s9, %s854_s7 }
 0x424   :  { %p665_p11 = pnand %p663_p10, %p660_p9 }
 0x426   :  { %668 = shalt.err (!%p665_p11)
}
 0x427   :  { %s686_s16 = smov 128   ;;  %s687_s0 = smov 8  }
 0x428   :  { %421 = dma.vmem_to_hbm [thread:$0]  %s416_s6, 256, %s854_s7, [#allocation4], %s686_s16, %s686_s16, %s687_s0  }
 0x429   :  { %675 = dma.done.wait [#allocation4], 256  }
 0x42a   :  { %676 = vsyncadd [#allocation4], 4294967040 }
 0x42b   :  { %425 = vsyncpa [#allocation3], 1 }
 0x42c   :  { %426 = vsyncpa [#allocation6], 1 }
 0x42d   :  { %427 = vsyncpa [#allocation9], 1 }
 0x42e   :  { %428 = vsyncpa [#allocation4], 1 }

// kernel: tpu_custom_call.1
= control target key start
LH: loop header
LB: loop body
LE: loop exit
PB: predicated region body
PF: predicated region fallthrough
CT: control target
= control target key end

     0   :  { %12 = vsyncpa [#allocation3], 0  ;;  %s847_s0 = inlined_call_operand.hbm [shape: bf16[16,32], index: 0, kind: input, shape index: {}]   ;;  %s848_s1 = inlined_call_operand.hbm [shape: bf16[32,128], index: 1, kind: input, shape index: {}]   ;;  %s849_s2 = inlined_call_operand.vmem [shape: f32[1,128], index: 2, kind: input, shape index: {}]   ;;  %s850_s3 = inlined_call_operand.hbm [shape: bf16[128,128], index: 3, kind: input, shape index: {}]   ;;  %s851_s4 = inlined_call_operand.vmem [shape: f32[1,128], index: 4, kind: input, shape index: {}]   ;;  %s852_s5 = inlined_call_operand.hbm [shape: bf16[128,128], index: 5, kind: input, shape index: {}]   ;;  %s853_s6 = inlined_call_operand.vmem [shape: f32[1,128], index: 6, kind: input, shape index: {}]   ;;  %s854_s7 = inlined_call_operand.hbm [shape: f32[16,128], index: 7, kind: output, shape index: {}]  }
   0x1   :  { %13 = vsyncpa [#allocation6], 0 }
   0x2   :  { %14 = vsyncpa [#allocation9], 0 }
   0x3   :  { %15 = vsyncpa [#allocation4], 0  ;;  %s677_s24 = smov [#allocation5]   ;;  %s678_s26 = smov [#allocation2]  }
   0x4   :  { %s33_s25 = sshll.u32 %s677_s24, 4  ;;  %s21_s27 = sshll.u32 %s678_s26, 4  ;;  %s34_s25 = int_to_ptr.vmem [resolvable:$true] %s33_s25  ;;  %s728_s27 = int_to_ptr.vmem [resolvable:$true] %s21_s27 }
   0x5   :  { %s559_s30 = scalar_lea.hbm %s848_s1, 256 }
   0x6   :  { %p560_p0 = scmp.ne.s32.totalorder %s848_s1, %s559_s30  ;;  %p563_p1 = scmp.lt.u32.totalorder %s559_s30, %s848_s1 }
   0x8   :  { %p565_p2 = pnand %p563_p1, %p560_p0 }
   0xa   :  { %568 = shalt.err (!%p565_p2)
}
   0xb   :  { %s569_s12 = scalar_lea.vmem %s34_s25, 256  ;;  %p574_p4 = scmp.lt.s32.totalorder %s34_s25, %s34_s25 }
   0xc   :  { %p570_p3 = scmp.ne.s32.totalorder %s34_s25, %s569_s12  ;;  %p575_p5 = scmp.lt.s32.totalorder %s569_s12, %s569_s12 }
   0xe   :  { %p576_p6 = por %p575_p5, %p574_p4 }
  0x10   :  { %p577_p7 = pnand %p576_p6, %p570_p3 }
  0x12   :  { %580 = shalt.err (!%p577_p7)
}
  0x13   :  { %s679_s13 = smov 64   ;;  %s680_s14 = smov 4  }
  0x14   :  { %39 = dma.hbm_to_vmem [thread:$0]  %s848_s1, 256, %s34_s25, [#allocation6], %s679_s13, %s679_s13, %s680_s14  }
  0x15   :  { %s581_s19 = scalar_lea.hbm %s847_s0, 128 }
  0x16   :  { %p582_p8 = scmp.ne.s32.totalorder %s847_s0, %s581_s19  ;;  %p585_p9 = scmp.lt.u32.totalorder %s581_s19, %s847_s0 }
  0x18   :  { %p587_p10 = pnand %p585_p9, %p582_p8 }
  0x1a   :  { %590 = shalt.err (!%p587_p10)
}
  0x1b   :  { %s591_s24 = scalar_lea.vmem %s728_s27, 128  ;;  %p596_p12 = scmp.lt.s32.totalorder %s728_s27, %s728_s27 }
  0x1c   :  { %p592_p11 = scmp.ne.s32.totalorder %s728_s27, %s591_s24  ;;  %p597_p13 = scmp.lt.s32.totalorder %s591_s24, %s591_s24 }
  0x1e   :  { %p598_p0 = por %p597_p13, %p596_p12 }
  0x20   :  { %p599_p1 = pnand %p598_p0, %p592_p11 }
  0x22   :  { %602 = shalt.err (!%p599_p1)
}
  0x23   :  { %27 = dma.hbm_to_vmem [thread:$0]  %s847_s0, 128, %s728_s27, [#allocation3], %s679_s13, %s679_s13, %s680_s14  }
  0x24   :  { %s681_s26 = smov [#allocation7]   ;;  %s682_s29 = smov [#allocation8]  }
  0x25   :  { %s47_s28 = sshll.u32 %s681_s26, 4  ;;  %s61_s30 = sshll.u32 %s682_s29, 4  ;;  %s48_s28 = int_to_ptr.vmem [resolvable:$true] %s47_s28  ;;  %s765_s30 = int_to_ptr.vmem [resolvable:$true] %s61_s30 }
  0x26   :  { %s603_s10 = scalar_lea.hbm %s850_s3, 1024 }
  0x27   :  { %p604_p2 = scmp.ne.s32.totalorder %s850_s3, %s603_s10  ;;  %p607_p3 = scmp.lt.u32.totalorder %s603_s10, %s850_s3 }
  0x29   :  { %p609_p4 = pnand %p607_p3, %p604_p2 }
  0x2b   :  { %612 = shalt.err (!%p609_p4)
}
  0x2c   :  { %s613_s0 = scalar_lea.vmem %s48_s28, 1024  ;;  %p618_p6 = scmp.lt.s32.totalorder %s48_s28, %s48_s28 }
  0x2d   :  { %p614_p5 = scmp.ne.s32.totalorder %s48_s28, %s613_s0  ;;  %p619_p7 = scmp.lt.s32.totalorder %s613_s0, %s613_s0 }
  0x2f   :  { %p620_p8 = por %p619_p7, %p618_p6 }
  0x31   :  { %p621_p9 = pnand %p620_p8, %p614_p5 }
  0x33   :  { %624 = shalt.err (!%p621_p9)
}
  0x34   :  { %53 = dma.hbm_to_vmem [thread:$0]  %s850_s3, 1024, %s48_s28, [#allocation6], %s679_s13, %s679_s13, %s680_s14  }
  0x35   :  { %s625_s20 = scalar_lea.hbm %s852_s5, 1024 }
  0x36   :  { %p626_p10 = scmp.ne.s32.totalorder %s852_s5, %s625_s20  ;;  %p629_p11 = scmp.lt.u32.totalorder %s625_s20, %s852_s5 }
  0x38   :  { %p631_p12 = pnand %p629_p11, %p626_p10 }
  0x3a   :  { %634 = shalt.err (!%p631_p12)
}
  0x3b   :  { %s635_s1 = scalar_lea.vmem %s765_s30, 1024  ;;  %p640_p0 = scmp.lt.s32.totalorder %s765_s30, %s765_s30 }
  0x3c   :  { %p636_p13 = scmp.ne.s32.totalorder %s765_s30, %s635_s1  ;;  %p641_p1 = scmp.lt.s32.totalorder %s635_s1, %s635_s1 }
  0x3e   :  { %p642_p2 = por %p641_p1, %p640_p0 }
  0x40   :  { %p643_p3 = pnand %p642_p2, %p636_p13 }
  0x42   :  { %646 = shalt.err (!%p643_p3)
}
  0x43   :  { %67 = dma.hbm_to_vmem [thread:$0]  %s852_s5, 1024, %s765_s30, [#allocation9], %s679_s13, %s679_s13, %s680_s14  }
  0x44   :  { %669 = dma.done.wait [#allocation3], 128  }
  0x45   :  { %670 = vsyncadd [#allocation3], 4294967168 }
  0x46   :  { %671 = dma.done.wait [#allocation6], 1280  }
  0x47   :  { %672 = vsyncadd [#allocation6], 4294966016 }
  0x48   :  { %673 = dma.done.wait [#allocation9], 1024  }
  0x49   :  { %674 = vsyncadd [#allocation9], 4294966272  ;;  %v683_v0 = vmov 0.0   ;;  %vm684_vm0 = vmmov 0   ;;  %v532_v1 = vld [vmem:[#allocation5] sm:$0xff]   ;;  %v533_v2 = vld [vmem:[#allocation5 + $0x8] sm:$0xff]  }
  0x4a   :  { %473 = vmatprep.subr.bf16.mxu0 %v683_v0  ;;  %477 = vmatprep.mubr.msk.bf16.mxu0 %vm684_vm0, %v683_v0  ;;  %v535_v3 = vld [vmem:[#allocation7] sm:$0xff]   ;;  %v534_v4 = vld [vmem:[#allocation2] sm:$0xff]   ;;  %vm113_vm1 = vcmask 261120   ;;  %v537_v6 = vld [vmem:[#allocation7 + $0x10] sm:$0xff]  }
  0x4b   :  { %481 = vmatprep.subr.bf16.mxu1 %v683_v0  ;;  %497 = vmatprep.mubr.msk.bf16.mxu1 %vm684_vm0, %v683_v0  ;;  %v536_v5 = vld [vmem:[#allocation7 + $0x8] sm:$0xff]   ;;  %v538_v7 = vld [vmem:[#allocation7 + $0x18] sm:$0xff]   ;;  %v539_v8 = vld [vmem:[#allocation7 + $0x20] sm:$0xff]  }
  0x4c   :  { %474 = vmatpush3.bf16.msra.mxu0 %v532_v1  ;;  %482 = vmatpush3.bf16.msra.mxu1 %v535_v3  ;;  %v540_v9 = vld [vmem:[#allocation7 + $0x28] sm:$0xff]   ;;  %v541_v10 = vld [vmem:[#allocation7 + $0x30] sm:$0xff]   ;;  %v542_v11 = vld [vmem:[#allocation7 + $0x38] sm:$0xff]  }
  0x4d   :  { %475 = vmatprep.subr.bf16.mxu0 %v683_v0  ;;  %483 = vmatprep.subr.bf16.mxu1 %v683_v0  ;;  %v543_v12 = vld [vmem:[#allocation8] sm:$0xff]   ;;  %v544_v13 = vld [vmem:[#allocation8 + $0x8] sm:$0xff]   ;;  %v545_v14 = vld [vmem:[#allocation8 + $0x10] sm:$0xff]  }
  0x4e   :  { %v546_v15 = vld [vmem:[#allocation8 + $0x18] sm:$0xff]   ;;  %v547_v16 = vld [vmem:[#allocation8 + $0x20] sm:$0xff]   ;;  %v548_v17 = vld [vmem:[#allocation8 + $0x28] sm:$0xff]  }
  0x4f   :  { %v429_v18 = vld [vmem:[%s849_s2] ss:$0 sm:$0xff]  ;;  %v549_v28 = vld [vmem:[#allocation8 + $0x30] sm:$0xff]   ;;  %v550_v29 = vld [vmem:[#allocation8 + $0x38] sm:$0xff]  }
  0x50   :  { %476 = vmatpush3.bf16.msra.mxu0 %v533_v2  ;;  %484 = vmatpush3.bf16.msra.mxu1 %v536_v5  ;;  %v434_v30 = vld [vmem:[%s851_s4] ss:$0 sm:$0xff]  ;;  %s685_s4 = smov [#allocation10]  }
  0x51   :  { %501 = vmatprep.subr.bf16.mxu0 %v683_v0  ;;  %485 = vmatprep.subr.bf16.mxu1 %v683_v0  ;;  %v443_v40 = vld [vmem:[%s853_s6] ss:$0 sm:$0xff]  ;;  %s415_s6 = sshll.u32 %s685_s4, 4  ;;  %s416_s6 = int_to_ptr.vmem [resolvable:$true] %s415_s6 }
  0x52   :  { %s647_s29 = scalar_lea.vmem %s416_s6, 256  ;;  %p652_p5 = scmp.lt.s32.totalorder %s416_s6, %s416_s6 }
  0x53   :  { %478 = vmatmul.mubr.msk.bf16.vlgmr.msra.gmra.mrb[0].mxu0 %vm113_vm1, %v534_v4  ;;  %p648_p4 = scmp.ne.s32.totalorder %s416_s6, %s647_s29  ;;  %p653_p6 = scmp.lt.s32.totalorder %s647_s29, %s647_s29 }
  0x54   :  { %517 = vmatprep.mubr.msk.bf16.mxu0 %vm684_vm0, %v683_v0  ;;  %486 = vmatpush3.bf16.msra.mxu1 %v537_v6 }
  0x55   :  { %487 = vmatprep.subr.bf16.mxu1 %v683_v0  ;;  %502 = vmatpush3.bf16.msra.mxu0 %v543_v12  ;;  %p654_p7 = por %p653_p6, %p652_p5 }
  0x56   :  { %503 = vmatprep.subr.bf16.mxu0 %v683_v0 }
  0x57   :  { %p655_p8 = pnand %p654_p7, %p648_p4 }
  0x58   :  { %488 = vmatpush3.bf16.msra.mxu1 %v538_v7 }
  0x59   :  { %489 = vmatprep.subr.bf16.mxu1 %v683_v0  ;;  %504 = vmatpush3.bf16.msra.mxu0 %v544_v13 }
  0x5a   :  { %505 = vmatprep.subr.bf16.mxu0 %v683_v0 }
  0x5c   :  { %490 = vmatpush3.bf16.msra.mxu1 %v539_v8 }
  0x5d   :  { %491 = vmatprep.subr.bf16.mxu1 %v683_v0  ;;  %506 = vmatpush3.bf16.msra.mxu0 %v545_v14 }
  0x5e   :  { %507 = vmatprep.subr.bf16.mxu0 %v683_v0 }
  0x60   :  { %492 = vmatpush3.bf16.msra.mxu1 %v540_v9 }
  0x61   :  { %493 = vmatprep.subr.bf16.mxu1 %v683_v0  ;;  %508 = vmatpush3.bf16.msra.mxu0 %v546_v15 }
  0x62   :  { %509 = vmatprep.subr.bf16.mxu0 %v683_v0 }
  0x64   :  { %494 = vmatpush3.bf16.msra.mxu1 %v541_v10 }
  0x65   :  { %495 = vmatprep.subr.bf16.mxu1 %v683_v0  ;;  %510 = vmatpush3.bf16.msra.mxu0 %v547_v16 }
  0x66   :  { %511 = vmatprep.subr.bf16.mxu0 %v683_v0 }
  0x68   :  { %496 = vmatpush3.bf16.msra.mxu1 %v542_v11 }
  0x69   :  { %512 = vmatpush3.bf16.msra.mxu0 %v548_v17 }
  0x6a   :  { %513 = vmatprep.subr.bf16.mxu0 %v683_v0 }
  0x6d   :  { %514 = vmatpush3.bf16.msra.mxu0 %v549_v28 }
  0x6e   :  { %515 = vmatprep.subr.bf16.mxu0 %v683_v0 }
  0x71   :  { %516 = vmatpush3.bf16.msra.mxu0 %v550_v29 }
 0x126   :  { %v151_v19 = vpop.f32.mrb[0].mxu0 }
 0x127   :  { %v152_v20 = vadd.f32 %v429_v18, %v151_v19  ;;  %v479_v21 = vpop.f32.mrb[1].mxu0 }
 0x128   :  { %v154_v22 = vpop.f32.mrb[2].mxu0 }
 0x129   :  { %v155_v23 = vadd.f32 %v429_v18, %v154_v22  ;;  %v480_v24 = vpop.f32.mrb[3].mxu0  ;;  %v158_v25 = vmax.f32 %v152_v20, 0.0 }
 0x12b   :  { %v159_v26 = vmax.f32 %v155_v23, 0.0 }
 0x12d   :  { %v160_v27 = vpack.c.bf16 %v159_v26, %v158_v25 }
 0x12f   :  { %498 = vmatmul.mubr.bf16.vlgmr.msra.gmra.mrb[0].mxu1 %v160_v27 }
 0x202   :  { %v266_v31 = vpop.f32.mrb[0].mxu1 }
 0x203   :  { %v267_v32 = vadd.f32 %v434_v30, %v266_v31  ;;  %v499_v33 = vpop.f32.mrb[1].mxu1 }
 0x204   :  { %v269_v34 = vpop.f32.mrb[2].mxu1 }
 0x205   :  { %v270_v35 = vadd.f32 %v434_v30, %v269_v34  ;;  %v500_v36 = vpop.f32.mrb[3].mxu1  ;;  %v273_v37 = vmax.f32 %v267_v32, 0.0 }
 0x207   :  { %v274_v38 = vmax.f32 %v270_v35, 0.0 }
 0x209   :  { %v275_v39 = vpack.c.bf16 %v274_v38, %v273_v37 }
 0x20b   :  { %518 = vmatmul.mubr.bf16.vlgmr.msra.gmra.mrb[4].mxu0 %v275_v39 }
 0x2de   :  { %v381_v41 = vpop.f32.mrb[4].mxu0 }
 0x2df   :  { %v382_v42 = vadd.f32 %v443_v40, %v381_v41  ;;  %v519_v43 = vpop.f32.mrb[5].mxu0 }
 0x2e0   :  { %v384_v44 = vpop.f32.mrb[6].mxu0 }
 0x2e1   :  { %388 = vmax.xlane.f32.xlu0 %v382_v42  ;;  %v520_v45 = vpop.f32.mrb[7].mxu0  ;;  %v385_v46 = vadd.f32 %v443_v40, %v384_v44 }
 0x2e5   :  { %390 = vmax.xlane.f32.xlu0 %v385_v46 }
 0x36e   :  { %v389_v47 = vpop.xlane.xlu0 %388 }
 0x36f   :  { %v392_v48 = vsub.f32 %v382_v42, %v389_v47 }
 0x371   :  { %v394_v49 = vmul.f32 1.442695, %v392_v48 }
 0x372   :  { %v391_v50 = vpop.xlane.xlu0 %390 }
 0x373   :  { %v393_v51 = vsub.f32 %v385_v46, %v391_v50  ;;  %551 = vpow2.f32 %v394_v49 }
 0x375   :  { %v396_v52 = vmul.f32 1.442695, %v393_v51 }
 0x377   :  { %553 = vpow2.f32 %v396_v52 }
 0x37d   :  { %v552_v53 = vpop.eup %551 }
 0x37e   :  { %398 = vadd.xlane.f32.xlu1 %v552_v53 }
 0x381   :  { %v554_v54 = vpop.eup %553 }
 0x382   :  { %400 = vadd.xlane.f32.xlu1 %v554_v54 }
 0x40b   :  { %v399_v55 = vpop.xlane.xlu1 %398 }
 0x40c   :  { %555 = vlog2.f32 %v399_v55 }
 0x40f   :  { %v401_v56 = vpop.xlane.xlu1 %400 }
 0x410   :  { %557 = vlog2.f32 %v401_v56 }
 0x416   :  { %v556_v57 = vpop.eup %555 }
 0x417   :  { %v403_v58 = vmul.f32 0.6931472, %v556_v57 }
 0x419   :  { %v406_v59 = vsub.f32 %v392_v48, %v403_v58 }
 0x41a   :  { %v558_v60 = vpop.eup %557 }
 0x41b   :  { %408 = vst [vmem:[#allocation10] sm:$0xff] %v406_v59  ;;  %v405_v61 = vmul.f32 0.6931472, %v558_v60 }
 0x41d   :  { %v407_v62 = vsub.f32 %v393_v51, %v405_v61 }
 0x41f   :  { %409 = vst [vmem:[#allocation10 + $0x8] sm:$0xff] %v407_v62 }
 0x420   :  { %658 = shalt.err (!%p655_p8)
}
 0x421   :  { %s659_s9 = scalar_lea.hbm %s854_s7, 256 }
 0x422   :  { %p660_p9 = scmp.ne.s32.totalorder %s854_s7, %s659_s9  ;;  %p663_p10 = scmp.lt.u32.totalorder %s659_s9, %s854_s7 }
 0x424   :  { %p665_p11 = pnand %p663_p10, %p660_p9 }
 0x426   :  { %668 = shalt.err (!%p665_p11)
}
 0x427   :  { %s686_s16 = smov 128   ;;  %s687_s0 = smov 8  }
 0x428   :  { %421 = dma.vmem_to_hbm [thread:$0]  %s416_s6, 256, %s854_s7, [#allocation4], %s686_s16, %s686_s16, %s687_s0  }
 0x429   :  { %675 = dma.done.wait [#allocation4], 256  }
 0x42a   :  { %676 = vsyncadd [#allocation4], 4294967040 }
 0x42b   :  { %425 = vsyncpa [#allocation3], 1 }
 0x42c   :  { %426 = vsyncpa [#allocation6], 1 }
 0x42d   :  { %427 = vsyncpa [#allocation9], 1 }
 0x42e   :  { %428 = vsyncpa [#allocation4], 1 }

</bundles_post_ra>
